<compile_context>
chip_gen: v6e
topology: v6e:2x2x1
jax: 0.10.0
libtpu: 0.0.40
codegen_flags: <defaults>
</compile_context>

<pallas_src>
import jax
import jax.numpy as jnp
from jax.experimental import pallas as pl
from jax.experimental.pallas import tpu as pltpu


def _gate_kernel(x_ref, scale_ref, o_ref):
    # x_ref:     (tm, W) tile of the lane-folded input
    # scale_ref: (1,  W) resident (tiled) scale row, broadcast over sublanes
    # o_ref:     (tm, W) output tile
    o_ref[...] = x_ref[...] * scale_ref[...]


def _round_down(v, m):
    return (v // m) * m


def _round_up(v, m):
    return -(-v // m) * m


def gate_layer(x, scale, *, vmem_block_bytes=2 * 1024 * 1024,
               target_lane_width=8192):
    """Apply `scale * x` where scale has shape (1, 1, 1, C) and x is (..., C)."""
    orig_shape = x.shape
    C = orig_shape[-1]
    M = 1
    for d in orig_shape[:-1]:
        M *= d

    dtype = x.dtype
    itemsize = jnp.dtype(dtype).itemsize
    # sublane multiple for legal block shapes (8 for 32-bit, 16 for 16-bit, ...)
    sub = 8 if itemsize >= 4 else (16 if itemsize == 2 else 32)

    # ---- fold rows into the lane dimension (reshape only, no data copy) ----
    # Pick the largest k that divides M with k*C <= target_lane_width, so the
    # folded array (Mf, W) has a wide lane-dense last dim and no padding pass.
    k_max = max(1, min(M, target_lane_width // max(C, 1)))
    k = 1
    for cand in range(k_max, 0, -1):
        if M % cand == 0:
            k = cand
            break
    Mf = M // k
    W = k * C

    x2d = x.reshape(Mf, W)
    # Repeat the per-channel scale k times so it lines up with the folded rows.
    scale_row = jnp.tile(scale.reshape(1, C).astype(dtype), (1, k))  # (1, W)

    # ---- block-row count from a VMEM byte budget ---------------------------
    row_bytes = W * itemsize
    tm = max(sub, _round_down(max(vmem_block_bytes // row_bytes, 1), sub))
    if tm >= Mf:
        tm = Mf  # single full-extent block (full-dim block is always legal)
    grid_m = pl.cdiv(Mf, tm)

    # Give the v7x megacore (2 TCs) something to shard when there is enough
    # work; harmless single-TC on v5e/v6e.
    if grid_m < 2 and Mf >= 2 * sub:
        tm = min(Mf, _round_up(_round_up(Mf, 2) // 2, sub))
        grid_m = pl.cdiv(Mf, tm)

    out = pl.pallas_call(
        _gate_kernel,
        out_shape=jax.ShapeDtypeStruct((Mf, W), dtype),
        grid_spec=pltpu.PrefetchScalarGridSpec(
            num_scalar_prefetch=0,
            grid=(grid_m,),
            in_specs=[
                pl.BlockSpec((tm, W), lambda i: (i, 0)),
                pl.BlockSpec((1, W), lambda i: (0, 0)),  # resident, no re-DMA
            ],
            out_specs=pl.BlockSpec((tm, W), lambda i: (i, 0)),
        ),
        compiler_params=pltpu.CompilerParams(
            dimension_semantics=("parallel",),
        ),
    )(x2d, scale_row)

    return out.reshape(orig_shape)


if __name__ == "__main__":
    key = jax.random.PRNGKey(0)

    # Shapes consistent with the module: x is (B, T1, T2, num_features),
    # scale is (1, 1, 1, num_features) filled with sqrt(0.5).
    B, T1, T2, C = 2, 8, 8, 128
    x = jax.random.normal(key, (B, T1, T2, C), dtype=jnp.float32)
    scale = jnp.full((1, 1, 1, C), 0.5 ** 0.5, dtype=jnp.float32)

    y = gate_layer(x, scale)
    jax.block_until_ready(y)
    assert jnp.allclose(y, scale * x, atol=1e-6, rtol=1e-6)

    # Extra robustness check: leading dims that don't divide a power-of-two tile.
    k2 = jax.random.PRNGKey(1)
    x2 = jax.random.normal(k2, (3, 5, 7, 128), dtype=jnp.float32)
    y2 = gate_layer(x2, scale)
    jax.block_until_ready(y2)
    assert jnp.allclose(y2, scale * x2, atol=1e-6, rtol=1e-6)

    # Extra robustness check: force multi-step grid with a partial tail block.
    k3 = jax.random.PRNGKey(2)
    x3 = jax.random.normal(k3, (2, 10, 8, 128), dtype=jnp.float32)
    y3 = gate_layer(x3, scale, vmem_block_bytes=24 * 1024,
                    target_lane_width=128)
    jax.block_until_ready(y3)
    assert jnp.allclose(y3, scale * x3, atol=1e-6, rtol=1e-6)

    print("KERNEL_OK")
</pallas_src>

<mosaic_0001>
module attributes {stable_mosaic.version = 11 : i64} {
  func.func @_gate_kernel(%arg0: i32, %arg1: memref<2x8192xf32, #tpu.memory_space<vmem>>, %arg2: memref<1x8192xf32, #tpu.memory_space<vmem>>, %arg3: memref<2x8192xf32, #tpu.memory_space<vmem>>) attributes {dimension_semantics = [#tpu.dimension_semantics<parallel>], iteration_bounds = array<i64: 1>, scalar_prefetch = 0 : i64, scratch_operands = 0 : i64, tpu.core_type = #tpu.core_type<tc>, window_params = [{transform_indices = @transform_0, window_bounds = array<i64: 2, 8192>}, {pipeline_mode = #tpu.pipeline_mode<synchronous>, transform_indices = @transform_1, window_bounds = array<i64: 1, 8192>}, {transform_indices = @transform_2, window_bounds = array<i64: 2, 8192>}]} {
    %c0 = arith.constant 0 : index
    %c0_0 = arith.constant 0 : index
    %0 = vector.load %arg1[%c0, %c0_0] : memref<2x8192xf32, #tpu.memory_space<vmem>>, vector<2x8192xf32>
    %c0_1 = arith.constant 0 : index
    %c0_2 = arith.constant 0 : index
    %1 = vector.load %arg2[%c0_1, %c0_2] : memref<1x8192xf32, #tpu.memory_space<vmem>>, vector<1x8192xf32>
    %2 = vector.broadcast %1 : vector<1x8192xf32> to vector<2x8192xf32>
    %3 = arith.mulf %0, %2 : vector<2x8192xf32>
    %c0_3 = arith.constant 0 : index
    %c0_4 = arith.constant 0 : index
    %4 = vector.load %arg3[%c0_3, %c0_4] : memref<2x8192xf32, #tpu.memory_space<vmem>>, vector<2x8192xf32>
    tpu.vector_store %arg3[%c0_3, %c0_4], %3 {strides = array<i32>} : memref<2x8192xf32, #tpu.memory_space<vmem>>, vector<2x8192xf32>,
    return
  }
  func.func @transform_0(%arg0: i32) -> (i32, i32) {
    %c0_i32 = arith.constant 0 : i32
    %c0_i32_0 = arith.constant 0 : i32
    return %arg0, %c0_i32 : i32, i32
  }
  func.func @transform_1(%arg0: i32) -> (i32, i32) {
    %c0_i32 = arith.constant 0 : i32
    %c0_i32_0 = arith.constant 0 : i32
    %c0_i32_1 = arith.constant 0 : i32
    return %c0_i32, %c0_i32_0 : i32, i32
  }
  func.func @transform_2(%arg0: i32) -> (i32, i32) {
    %c0_i32 = arith.constant 0 : i32
    %c0_i32_0 = arith.constant 0 : i32
    return %arg0, %c0_i32 : i32, i32
  }
}

</mosaic_0001>

<bundles_post_ra>
// kernel: tpu_custom_call.1
= control target key start
LH: loop header
LB: loop body
LE: loop exit
PB: predicated region body
PF: predicated region fallthrough
CT: control target
= control target key end

     0   :  { %7 = vsyncpa [#allocation3], 0  ;;  %s872_s0 = inlined_call_operand.hbm [shape: f32[2,8192], index: 0, kind: input, shape index: {}]   ;;  %s873_s1 = inlined_call_operand.hbm [shape: f32[1,8192], index: 1, kind: input, shape index: {}]   ;;  %s874_s2 = inlined_call_operand.hbm [shape: f32[2,8192], index: 2, kind: output, shape index: {}]  }
   0x1   :  { %8 = vsyncpa [#allocation6], 0 }
   0x2   :  { %9 = vsyncpa [#allocation4], 0  ;;  %s730_s9 = smov [#allocation2]   ;;  %s731_s11 = smov [#allocation5]  }
   0x3   :  { %s16_s10 = sshll.u32 %s730_s9, 4  ;;  %s26_s12 = sshll.u32 %s731_s11, 4  ;;  %s17_s10 = int_to_ptr.vmem [resolvable:$true] %s16_s10  ;;  %s27_s12 = int_to_ptr.vmem [resolvable:$true] %s26_s12 }
   0x4   :  { %s672_s13 = scalar_lea.vmem %s17_s10, 2048  ;;  %p677_p1 = scmp.lt.s32.totalorder %s17_s10, %s17_s10 }
   0x5   :  { %p673_p0 = scmp.ne.s32.totalorder %s17_s10, %s672_s13  ;;  %p678_p2 = scmp.lt.s32.totalorder %s672_s13, %s672_s13 }
   0x7   :  { %p679_p3 = por %p678_p2, %p677_p1 }
   0x9   :  { %p680_p4 = pnand %p679_p3, %p673_p0 }
   0xb   :  { %683 = shalt.err (!%p680_p4)
}
   0xc   :  { %19 = dma.hbm_to_vmem [thread:$0]  %s872_s0, 2048, %s17_s10, [#allocation3]  }
   0xd   :  { %s692_s16 = scalar_lea.vmem %s27_s12, 1024  ;;  %p697_p6 = scmp.lt.s32.totalorder %s27_s12, %s27_s12 }
   0xe   :  { %p693_p5 = scmp.ne.s32.totalorder %s27_s12, %s692_s16  ;;  %p698_p7 = scmp.lt.s32.totalorder %s692_s16, %s692_s16 }
  0x10   :  { %p699_p8 = por %p698_p7, %p697_p6 }
  0x12   :  { %p700_p9 = pnand %p699_p8, %p693_p5 }
  0x14   :  { %703 = shalt.err (!%p700_p9)
}
  0x15   :  { %29 = dma.hbm_to_vmem [thread:$0]  %s873_s1, 1024, %s27_s12, [#allocation6]  }
  0x16   :  { %724 = dma.done.wait [#allocation3], 2048  }
  0x17   :  { %725 = vsyncadd [#allocation3], 4294965248 }
  0x18   :  { %726 = dma.done.wait [#allocation6], 1024  }
  0x19   :  { %727 = vsyncadd [#allocation6], 4294966272  ;;  %v68_v0 = vlaneseq  ;;  %v732_v1 = vmov 1983009808   ;;  %v52_v13 = vld [vmem:[#allocation5] sm:$0xff]  ;;  %v53_v19 = vld [vmem:[#allocation5 + $0x8] sm:$0xff] }
  0x1a   :  { %v327_v2 = vunpack.c.l.s4 %v732_v1  ;;  %v54_v36 = vld [vmem:[#allocation5 + $0x10] sm:$0xff]  ;;  %v36_v37 = vld [vmem:[#allocation2] sm:$0xff]  ;;  %v37_v43 = vld [vmem:[#allocation2 + $0x8] sm:$0xff]  ;;  %s733_s0 = smov [#allocation7]  }
  0x1b   :  { %v69_v3 = vshrl.u32 %v68_v0, 7  ;;  %v38_v52 = vld [vmem:[#allocation2 + $0x10] sm:$0xff]  ;;  %v55_v60 = vld [vmem:[#allocation5 + $0x18] sm:$0xff]  ;;  %s650_s1 = sshll.u32 %s733_s0, 4  ;;  %s651_s1 = int_to_ptr.vmem [resolvable:$true] %s650_s1 }
  0x1c   :  { %v328_v4 = vunpack.c.0.s8 %v327_v2  ;;  %v39_v2 = vld [vmem:[#allocation2 + $0x18] sm:$0xff]  ;;  %s704_s19 = scalar_lea.vmem %s651_s1, 2048  ;;  %p709_p11 = scmp.lt.s32.totalorder %s651_s1, %s651_s1 }
  0x1d   :  { %v755_v5 = vsub.s32 0, %v69_v3  ;;  %v757_v6 = vsub.s32 1, %v69_v3  ;;  %v759_v7 = vsub.s32 2, %v69_v3  ;;  %v761_v8 = vsub.s32 3, %v69_v3  ;;  %p705_p10 = scmp.ne.s32.totalorder %s651_s1, %s704_s19  ;;  %p710_p12 = scmp.lt.s32.totalorder %s704_s19, %s704_s19 }
  0x1e   :  { %v763_v9 = vsub.s32 4, %v69_v3  ;;  %v765_v10 = vsub.s32 5, %v69_v3  ;;  %v767_v11 = vsub.s32 6, %v69_v3  ;;  %v769_v12 = vsub.s32 7, %v69_v3 }
  0x1f   :  { %v771_v14 = vsub.s32 %v328_v4, %v69_v3  ;;  %v71_v15 = vrot.slane %v52_v13, %v755_v5  ;;  %v75_v16 = vrot.slane %v52_v13, %v757_v6  ;;  %v79_v17 = vrot.slane %v52_v13, %v759_v7  ;;  %p711_p13 = por %p710_p12, %p709_p11 }
  0x20   :  { %v83_v18 = vrot.slane %v52_v13, %v761_v8  ;;  %v87_v20 = vrot.slane %v52_v13, %v763_v9  ;;  %v91_v21 = vrot.slane %v52_v13, %v765_v10  ;;  %v95_v22 = vrot.slane %v52_v13, %v767_v11 }
  0x21   :  { %v99_v23 = vrot.slane %v52_v13, %v769_v12  ;;  %v324_v24 = vcombine.low %v71_v15, %v75_v16  ;;  %v103_v26 = vrot.slane %v53_v19, %v755_v5  ;;  %v107_v27 = vrot.slane %v53_v19, %v757_v6  ;;  %p712_p0 = pnand %p711_p13, %p705_p10 }
  0x22   :  { %v325_v25 = vcombine.low %v79_v17, %v83_v18  ;;  %v341_v28 = vcombine.low %v87_v20, %v91_v21  ;;  %v111_v30 = vrot.slane %v53_v19, %v759_v7  ;;  %v115_v31 = vrot.slane %v53_v19, %v761_v8 }
  0x23   :  { %v342_v29 = vcombine.low %v95_v22, %v99_v23  ;;  %v332_v32 = vrot.slane %v324_v24, %v771_v14  ;;  %v358_v34 = vcombine.low %v103_v26, %v107_v27  ;;  %v119_v35 = vrot.slane %v53_v19, %v763_v9  ;;  %v56_v23 = vld [vmem:[#allocation5 + $0x20] sm:$0xff] }
  0x24   :  { %v339_v33 = vrot.slane %v325_v25, %v771_v14  ;;  %v349_v38 = vrot.slane %v341_v28, %v771_v14  ;;  %v359_v40 = vcombine.low %v111_v30, %v115_v31  ;;  %v123_v41 = vrot.slane %v53_v19, %v765_v10  ;;  %v40_v25 = vld [vmem:[#allocation2 + $0x20] sm:$0xff] }
  0x25   :  { %v356_v39 = vrot.slane %v342_v29, %v771_v14  ;;  %v366_v44 = vrot.slane %v358_v34, %v771_v14  ;;  %v127_v45 = vrot.slane %v53_v19, %v767_v11  ;;  %v131_v46 = vrot.slane %v53_v19, %v769_v12 }
  0x26   :  { %v340_v42 = vcombine.low %v332_v32, %v339_v33  ;;  %v373_v48 = vrot.slane %v359_v40, %v771_v14  ;;  %v375_v49 = vcombine.low %v119_v35, %v123_v41  ;;  %v135_v50 = vrot.slane %v54_v36, %v755_v5  ;;  %v41_v33 = vld [vmem:[#allocation2 + $0x28] sm:$0xff] }
  0x27   :  { %v357_v47 = vcombine.low %v349_v38, %v356_v39  ;;  %v376_v53 = vcombine.low %v127_v45, %v131_v46  ;;  %v139_v54 = vrot.slane %v54_v36, %v757_v6  ;;  %v143_v55 = vrot.slane %v54_v36, %v759_v7  ;;  %v57_v46 = vld [vmem:[#allocation5 + $0x28] sm:$0xff] }
  0x28   :  { %v612_v51 = vmul.f32 %v340_v42, %v36_v37  ;;  %v374_v57 = vcombine.low %v366_v44, %v373_v48  ;;  %v383_v58 = vrot.slane %v375_v49, %v771_v14  ;;  %v147_v59 = vrot.slane %v54_v36, %v761_v8  ;;  %v42_v48 = vld [vmem:[#allocation2 + $0x30] sm:$0xff] }
  0x29   :  { %v613_v56 = vmul.f32 %v357_v47, %v37_v43  ;;  %v390_v61 = vrot.slane %v376_v53, %v771_v14  ;;  %v392_v62 = vcombine.low %v135_v50, %v139_v54  ;;  %v151_v63 = vrot.slane %v54_v36, %v763_v9 }
  0x2a   :  { %628 = vst [vmem:[#allocation7] sm:$0xff] %v612_v51  ;;  %v155_v0 = vrot.slane %v54_v36, %v765_v10  ;;  %v614_v1 = vmul.f32 %v374_v57, %v38_v52  ;;  %v393_v3 = vcombine.low %v143_v55, %v147_v59  ;;  %v159_v4 = vrot.slane %v54_v36, %v767_v11 }
  0x2b   :  { %629 = vst [vmem:[#allocation7 + $0x8] sm:$0xff] %v613_v56  ;;  %v163_v13 = vrot.slane %v54_v36, %v769_v12  ;;  %v391_v15 = vcombine.low %v383_v58, %v390_v61  ;;  %v400_v16 = vrot.slane %v392_v62, %v771_v14  ;;  %v167_v18 = vrot.slane %v55_v60, %v755_v5  ;;  %v43_v56 = vld [vmem:[#allocation2 + $0x38] sm:$0xff] }
  0x2c   :  { %v409_v17 = vcombine.low %v151_v63, %v155_v0  ;;  %630 = vst [vmem:[#allocation7 + $0x10] sm:$0xff] %v614_v1  ;;  %v407_v19 = vrot.slane %v393_v3, %v771_v14  ;;  %v171_v21 = vrot.slane %v55_v60, %v757_v6  ;;  %v175_v22 = vrot.slane %v55_v60, %v759_v7 }
  0x2d   :  { %v410_v20 = vcombine.low %v159_v4, %v163_v13  ;;  %v615_v24 = vmul.f32 %v391_v15, %v39_v2  ;;  %v179_v27 = vrot.slane %v55_v60, %v761_v8  ;;  %v183_v28 = vrot.slane %v55_v60, %v763_v9  ;;  %v58_v13 = vld [vmem:[#allocation5 + $0x30] sm:$0xff] }
  0x2e   :  { %v417_v26 = vrot.slane %v409_v17, %v771_v14  ;;  %v408_v29 = vcombine.low %v400_v16, %v407_v19  ;;  %v426_v31 = vcombine.low %v167_v18, %v171_v21  ;;  %v187_v32 = vrot.slane %v55_v60, %v765_v10  ;;  %v44_v16 = vld [vmem:[#allocation2 + $0x40] sm:$0xff] }
  0x2f   :  { %v424_v30 = vrot.slane %v410_v20, %v771_v14  ;;  %631 = vst [vmem:[#allocation7 + $0x18] sm:$0xff] %v615_v24  ;;  %v427_v34 = vcombine.low %v175_v22, %v179_v27  ;;  %v191_v35 = vrot.slane %v55_v60, %v767_v11  ;;  %v195_v36 = vrot.slane %v55_v60, %v769_v12  ;;  %v45_v24 = vld [vmem:[#allocation2 + $0x48] sm:$0xff] }
  0x30   :  { %v199_v37 = vrot.slane %v56_v23, %v755_v5  ;;  %v616_v38 = vmul.f32 %v408_v29, %v40_v25  ;;  %v434_v40 = vrot.slane %v426_v31, %v771_v14  ;;  %v443_v41 = vcombine.low %v183_v28, %v187_v32 }
  0x31   :  { %v425_v39 = vcombine.low %v417_v26, %v424_v30  ;;  %v441_v42 = vrot.slane %v427_v34, %v771_v14  ;;  %v444_v43 = vcombine.low %v191_v35, %v195_v36  ;;  %v203_v44 = vrot.slane %v56_v23, %v757_v6 }
  0x32   :  { %v207_v45 = vrot.slane %v56_v23, %v759_v7  ;;  %632 = vst [vmem:[#allocation7 + $0x20] sm:$0xff] %v616_v38  ;;  %v451_v49 = vrot.slane %v443_v41, %v771_v14  ;;  %v211_v50 = vrot.slane %v56_v23, %v761_v8  ;;  %v215_v51 = vrot.slane %v56_v23, %v763_v9 }
  0x33   :  { %v617_v47 = vmul.f32 %v425_v39, %v41_v33  ;;  %v442_v52 = vcombine.low %v434_v40, %v441_v42  ;;  %v458_v53 = vrot.slane %v444_v43, %v771_v14  ;;  %v460_v54 = vcombine.low %v199_v37, %v203_v44  ;;  %v59_v37 = vld [vmem:[#allocation5 + $0x38] sm:$0xff]  ;;  %v46_v39 = vld [vmem:[#allocation2 + $0x50] sm:$0xff] }
  0x34   :  { %v219_v55 = vrot.slane %v56_v23, %v765_v10  ;;  %v461_v57 = vcombine.low %v207_v45, %v211_v50  ;;  %v223_v58 = vrot.slane %v56_v23, %v767_v11  ;;  %v227_v59 = vrot.slane %v56_v23, %v769_v12 }
  0x35   :  { %633 = vst [vmem:[#allocation7 + $0x28] sm:$0xff] %v617_v47  ;;  %v231_v60 = vrot.slane %v57_v46, %v755_v5  ;;  %v618_v61 = vmul.f32 %v442_v52, %v42_v48  ;;  %v459_v62 = vcombine.low %v451_v49, %v458_v53  ;;  %v468_v63 = vrot.slane %v460_v54, %v771_v14  ;;  %v47_v47 = vld [vmem:[#allocation2 + $0x58] sm:$0xff] }
  0x36   :  { %v477_v0 = vcombine.low %v215_v51, %v219_v55  ;;  %v475_v1 = vrot.slane %v461_v57, %v771_v14  ;;  %v478_v2 = vcombine.low %v223_v58, %v227_v59  ;;  %v235_v3 = vrot.slane %v57_v46, %v757_v6 }
  0x37   :  { %v239_v4 = vrot.slane %v57_v46, %v759_v7  ;;  %634 = vst [vmem:[#allocation7 + $0x30] sm:$0xff] %v618_v61  ;;  %v619_v15 = vmul.f32 %v459_v62, %v43_v56  ;;  %v243_v18 = vrot.slane %v57_v46, %v761_v8  ;;  %v247_v19 = vrot.slane %v57_v46, %v763_v9  ;;  %v48_v61 = vld [vmem:[#allocation2 + $0x60] sm:$0xff] }
  0x38   :  { %v485_v17 = vrot.slane %v477_v0, %v771_v14  ;;  %v476_v20 = vcombine.low %v468_v63, %v475_v1  ;;  %v492_v21 = vrot.slane %v478_v2, %v771_v14  ;;  %v494_v22 = vcombine.low %v231_v60, %v235_v3 }
  0x39   :  { %v251_v23 = vrot.slane %v57_v46, %v765_v10  ;;  %635 = vst [vmem:[#allocation7 + $0x38] sm:$0xff] %v619_v15  ;;  %v495_v25 = vcombine.low %v239_v4, %v243_v18  ;;  %v255_v26 = vrot.slane %v57_v46, %v767_v11  ;;  %v259_v27 = vrot.slane %v57_v46, %v769_v12  ;;  %v49_v4 = vld [vmem:[#allocation2 + $0x68] sm:$0xff] }
  0x3a   :  { %v263_v28 = vrot.slane %v58_v13, %v755_v5  ;;  %v620_v29 = vmul.f32 %v476_v20, %v44_v16  ;;  %v493_v30 = vcombine.low %v485_v17, %v492_v21  ;;  %v502_v31 = vrot.slane %v494_v22, %v771_v14  ;;  %v50_v20 = vld [vmem:[#allocation2 + $0x70] sm:$0xff] }
  0x3b   :  { %v511_v32 = vcombine.low %v247_v19, %v251_v23  ;;  %v509_v33 = vrot.slane %v495_v25, %v771_v14  ;;  %v512_v34 = vcombine.low %v255_v26, %v259_v27  ;;  %v267_v35 = vrot.slane %v58_v13, %v757_v6 }
  0x3c   :  { %v271_v36 = vrot.slane %v58_v13, %v759_v7  ;;  %636 = vst [vmem:[#allocation7 + $0x40] sm:$0xff] %v620_v29  ;;  %v621_v38 = vmul.f32 %v493_v30, %v45_v24  ;;  %v275_v41 = vrot.slane %v58_v13, %v761_v8  ;;  %v279_v42 = vrot.slane %v58_v13, %v763_v9 }
  0x3d   :  { %v519_v40 = vrot.slane %v511_v32, %v771_v14  ;;  %v510_v43 = vcombine.low %v502_v31, %v509_v33  ;;  %v526_v44 = vrot.slane %v512_v34, %v771_v14  ;;  %v528_v45 = vcombine.low %v263_v28, %v267_v35 }
  0x3e   :  { %v283_v46 = vrot.slane %v58_v13, %v765_v10  ;;  %637 = vst [vmem:[#allocation7 + $0x48] sm:$0xff] %v621_v38  ;;  %v529_v48 = vcombine.low %v271_v36, %v275_v41  ;;  %v287_v49 = vrot.slane %v58_v13, %v767_v11  ;;  %v291_v50 = vrot.slane %v58_v13, %v769_v12 }
  0x3f   :  { %v295_v51 = vrot.slane %v59_v37, %v755_v5  ;;  %v622_v52 = vmul.f32 %v510_v43, %v46_v39  ;;  %v527_v53 = vcombine.low %v519_v40, %v526_v44  ;;  %v536_v54 = vrot.slane %v528_v45, %v771_v14 }
  0x40   :  { %v545_v55 = vcombine.low %v279_v42, %v283_v46  ;;  %v543_v56 = vrot.slane %v529_v48, %v771_v14  ;;  %v546_v57 = vcombine.low %v287_v49, %v291_v50  ;;  %v299_v58 = vrot.slane %v59_v37, %v757_v6 }
  0x41   :  { %v303_v59 = vrot.slane %v59_v37, %v759_v7  ;;  %638 = vst [vmem:[#allocation7 + $0x50] sm:$0xff] %v622_v52  ;;  %v623_v60 = vmul.f32 %v527_v53, %v47_v47  ;;  %v307_v63 = vrot.slane %v59_v37, %v761_v8  ;;  %v311_v5 = vrot.slane %v59_v37, %v763_v9 }
  0x42   :  { %v553_v62 = vrot.slane %v545_v55, %v771_v14  ;;  %v544_v0 = vcombine.low %v536_v54, %v543_v56  ;;  %v560_v1 = vrot.slane %v546_v57, %v771_v14  ;;  %v562_v2 = vcombine.low %v295_v51, %v299_v58 }
  0x43   :  { %v315_v3 = vrot.slane %v59_v37, %v765_v10  ;;  %639 = vst [vmem:[#allocation7 + $0x58] sm:$0xff] %v623_v60  ;;  %v563_v6 = vcombine.low %v303_v59, %v307_v63  ;;  %v319_v7 = vrot.slane %v59_v37, %v767_v11  ;;  %v323_v13 = vrot.slane %v59_v37, %v769_v12  ;;  %v51_v11 = vld [vmem:[#allocation2 + $0x78] sm:$0xff] }
  0x44   :  { %v624_v15 = vmul.f32 %v544_v0, %v48_v61  ;;  %v561_v16 = vcombine.low %v553_v62, %v560_v1  ;;  %v570_v17 = vrot.slane %v562_v2, %v771_v14 }
  0x45   :  { %v579_v8 = vcombine.low %v311_v5, %v315_v3  ;;  %v577_v9 = vrot.slane %v563_v6, %v771_v14  ;;  %v580_v18 = vcombine.low %v319_v7, %v323_v13 }
  0x46   :  { %640 = vst [vmem:[#allocation7 + $0x60] sm:$0xff] %v624_v15  ;;  %v625_v19 = vmul.f32 %v561_v16, %v49_v4 }
  0x47   :  { %v587_v10 = vrot.slane %v579_v8, %v771_v14  ;;  %v578_v21 = vcombine.low %v570_v17, %v577_v9  ;;  %v594_v22 = vrot.slane %v580_v18, %v771_v14 }
  0x48   :  { %641 = vst [vmem:[#allocation7 + $0x68] sm:$0xff] %v625_v19 }
  0x49   :  { %v626_v12 = vmul.f32 %v578_v21, %v50_v20  ;;  %v595_v23 = vcombine.low %v587_v10, %v594_v22 }
  0x4b   :  { %642 = vst [vmem:[#allocation7 + $0x70] sm:$0xff] %v626_v12  ;;  %v627_v24 = vmul.f32 %v595_v23, %v51_v11 }
  0x4d   :  { %643 = vst [vmem:[#allocation7 + $0x78] sm:$0xff] %v627_v24 }
  0x4e   :  { %715 = shalt.err (!%p712_p0)
}
  0x4f   :  { %653 = dma.vmem_to_hbm [thread:$0]  %s651_s1, 2048, %s874_s2, [#allocation4]  }
  0x50   :  { %728 = dma.done.wait [#allocation4], 2048  }
  0x51   :  { %729 = vsyncadd [#allocation4], 4294965248 }
  0x52   :  { %657 = vsyncpa [#allocation3], 1 }
  0x53   :  { %658 = vsyncpa [#allocation6], 1 }
  0x54   :  { %659 = vsyncpa [#allocation4], 1 }

</bundles_post_ra>
